<compile_context>
chip_gen: v7x
topology: tpu7x:2x2x1
jax: 0.10.0
libtpu: 0.0.40
codegen_flags: <defaults>
</compile_context>

<pallas_src>
import functools
import math
import numpy as np
import jax
import jax.numpy as jnp
from jax.experimental import pallas as pl
from jax.experimental.pallas import tpu as pltpu


def _round_up(x, m):
    return ((x + m - 1) // m) * m


_SQRT1_2 = 1.0 / math.sqrt(2.0)


def _erf(x):
    # Abramowitz & Stegun 7.1.26 polynomial (max abs err ~1.5e-7). Kernel-only:
    # the divide is replaced by the EUP approx reciprocal + 2 Newton steps.
    a1, a2, a3, a4, a5 = (0.254829592, -0.284496736, 1.421413741,
                          -1.453152027, 1.061405429)
    p = 0.3275911
    ax = jnp.abs(x)
    d = 1.0 + p * ax
    t = pl.reciprocal(d, approx=True)      # EUP slot (near-free next to exp)
    t = t * (2.0 - d * t)                  # Newton refinement -> f32 accuracy
    t = t * (2.0 - d * t)
    poly = ((((a5 * t + a4) * t + a3) * t + a2) * t + a1) * t
    e = 1.0 - poly * jnp.exp(-ax * ax)
    return jnp.where(x >= 0.0, e, -e)


def _gelu_exact(x):
    # Matches PyTorch F.gelu (approximate='none'): 0.5*x*(1+erf(x/sqrt(2))).
    return 0.5 * x * (1.0 + _erf(x * _SQRT1_2))


def downsampling_forward(x, conv_w, conv_b, bn_gamma, bn_beta, bn_mean, bn_var,
                         *, stride=2, padding=1, eps=1e-5,
                         mxu_dtype=jnp.bfloat16):
    """x: (N, C_in, H, W) f32 NCHW. conv_w: (C_out, C_in, k, k)."""
    N, C_in, H, W = x.shape
    C_out, C_in_w, k, k2 = conv_w.shape
    assert C_in_w == C_in and k == k2
    assert stride == 2 and k % 2 == 1
    Hp, Wp = H + 2 * padding, W + 2 * padding
    assert Hp % 2 == 0 and Wp % 2 == 0, "need even padded extents for stride 2"
    Ho = (Hp - k) // 2 + 1
    Wo = (Wp - k) // 2 + 1
    Hq, Wq = Hp // 2, Wp // 2                     # polyphase (decimated) grid

    # Lane extents: TL = matmul/output lane width (multiple of 128 -> unmasked
    # vst); Lq_pad bounds all in-kernel slab reads (no OOB on VMEM refs).
    TL = _round_up(Ho * Wq, 128)
    max_s = (k // 2) * Wq + (k // 2)
    Lq_pad = _round_up(max(Hq * Wq, max_s + TL), 128)

    # ---- input prep: pad + stride-2 polyphase repack (layout pass only; the
    #      nine conv taps are assembled in-kernel from these 4 phases) --------
    xq = jnp.pad(x.astype(mxu_dtype),
                 ((0, 0), (0, 0), (padding, padding), (padding, padding)))
    phases = [xq[:, :, rp::2, cp::2] for rp in (0, 1) for cp in (0, 1)]
    xph = jnp.stack(phases, axis=1).reshape(N, 4, C_in, Hq * Wq)
    xph = jnp.pad(xph, ((0, 0), (0, 0), (0, 0), (0, Lq_pad - Hq * Wq)))

    # ---- fold conv bias + inference BN into the weights & one shift ---------
    inv_std = 1.0 / jnp.sqrt(bn_var.astype(jnp.float32) + eps)
    scale_v = bn_gamma.astype(jnp.float32) * inv_std
    shift2 = ((conv_b.astype(jnp.float32) - bn_mean.astype(jnp.float32))
              * scale_v + bn_beta.astype(jnp.float32)).reshape(C_out, 1)
    wfold = conv_w.astype(jnp.float32) * scale_v[:, None, None, None]
    wstk = (wfold.transpose(2, 3, 0, 1)            # (k, k, C_out, C_in)
            .reshape(k * k, C_out, C_in).astype(mxu_dtype))

    # Static tap table: tap t=(ky*k+kx) reads phase (ky%2, kx%2) at lane
    # offset s = (ky//2)*Wq + (kx//2); output lane j <-> (ho, wo)=(j//Wq, j%Wq).
    taps = []
    for ky in range(k):
        for kx in range(k):
            taps.append((ky * k + kx, (ky % 2) * 2 + (kx % 2),
                         (ky // 2) * Wq + (kx // 2)))

    def kernel(x_ref, w_ref, shift_ref, o_ref):
        # x_ref: (4, C_in, Lq_pad) polyphase slab of one image (mxu_dtype)
        # w_ref: (k*k, C_out, C_in) BN-folded weights (mxu_dtype)
        # shift_ref: (C_out, 1) f32 folded bias/BN shift
        # o_ref: (C_out, TL) f32
        acc = jnp.zeros((C_out, TL), jnp.float32)
        for t, ph, s in taps:                       # static python loop (9 taps)
            slab = x_ref[ph, :, pl.ds(s, TL)]       # (C_in, TL), static slice
            acc = acc + jnp.dot(w_ref[t], slab,
                                preferred_element_type=jnp.float32)
        y = acc + shift_ref[...]                    # folded bias + BatchNorm
        o_ref[...] = _gelu_exact(y).astype(o_ref.dtype)

    out = pl.pallas_call(
        kernel,
        out_shape=jax.ShapeDtypeStruct((N, C_out, TL), jnp.float32),
        grid_spec=pltpu.PrefetchScalarGridSpec(
            num_scalar_prefetch=0,
            grid=(N,),
            in_specs=[
                pl.BlockSpec((None, 4, C_in, Lq_pad), lambda n: (n, 0, 0, 0)),
                pl.BlockSpec((k * k, C_out, C_in), lambda n: (0, 0, 0)),
                pl.BlockSpec((C_out, 1), lambda n: (0, 0)),
            ],
            out_specs=pl.BlockSpec((None, C_out, TL), lambda n: (n, 0, 0)),
        ),
        compiler_params=pltpu.CompilerParams(
            dimension_semantics=("parallel",)),
    )(xph, wstk, shift2)

    # Crop lane padding + the invalid polyphase column (pure slicing, no
    # transpose — output is already batch-major NCHW).
    out = out[:, :, :Ho * Wq].reshape(N, C_out, Ho, Wq)[:, :, :, :Wo]
    return out


def _reference(x, conv_w, conv_b, bn_gamma, bn_beta, bn_mean, bn_var,
               *, stride=2, padding=1, eps=1e-5):
    """Pure-JAX (XLA) reference of the module's forward pass (eval-mode BN)."""
    y = jax.lax.conv_general_dilated(
        x, conv_w, window_strides=(stride, stride),
        padding=((padding, padding), (padding, padding)),
        dimension_numbers=("NCHW", "OIHW", "NCHW"))
    y = y + conv_b.reshape(1, -1, 1, 1)
    y = ((y - bn_mean.reshape(1, -1, 1, 1))
         / jnp.sqrt(bn_var.reshape(1, -1, 1, 1) + eps)
         * bn_gamma.reshape(1, -1, 1, 1) + bn_beta.reshape(1, -1, 1, 1))
    return jax.nn.gelu(y, approximate=False)


if __name__ == "__main__":
    N, C_in, H, W = 2, 4, 16, 16
    C_out = 8

    key = jax.random.PRNGKey(0)
    kx_, kw, kb, kg, km, kv = jax.random.split(key, 6)
    x = jax.random.normal(kx_, (N, C_in, H, W), dtype=jnp.float32)

    # Synthetic parameters consistent with the module's shapes / init style.
    xavier_std = math.sqrt(2.0 / (C_in * 9 + C_out * 9))
    conv_w = xavier_std * jax.random.normal(kw, (C_out, C_in, 3, 3), jnp.float32)
    # Module inits bias to zeros; use small nonzero values to exercise the path.
    conv_b = 0.1 * jax.random.normal(kb, (C_out,), jnp.float32)
    bn_gamma = 1.0 + 0.02 * jax.random.normal(kg, (C_out,), jnp.float32)
    bn_beta = jnp.zeros((C_out,), jnp.float32)
    bn_mean = 0.1 * jax.random.normal(km, (C_out,), jnp.float32)
    bn_var = 1.0 + 0.1 * jnp.abs(jax.random.normal(kv, (C_out,), jnp.float32))

    ref = _reference(x, conv_w, conv_b, bn_gamma, bn_beta, bn_mean, bn_var)

    # f32 MXU feed: tight numerical check against the XLA reference.
    fwd_f32 = jax.jit(functools.partial(downsampling_forward,
                                        mxu_dtype=jnp.float32))
    out_f32 = jax.block_until_ready(
        fwd_f32(x, conv_w, conv_b, bn_gamma, bn_beta, bn_mean, bn_var))
    assert out_f32.shape == (N, C_out, H // 2, W // 2), out_f32.shape
    np.testing.assert_allclose(np.asarray(out_f32), np.asarray(ref),
                               rtol=5e-4, atol=5e-4)

    # Default bf16 feed (halved HBM bytes on the dominant stream): looser tol.
    fwd_bf16 = jax.jit(functools.partial(downsampling_forward))
    out_bf16 = jax.block_until_ready(
        fwd_bf16(x, conv_w, conv_b, bn_gamma, bn_beta, bn_mean, bn_var))
    assert out_bf16.shape == (N, C_out, H // 2, W // 2), out_bf16.shape
    np.testing.assert_allclose(np.asarray(out_bf16), np.asarray(ref),
                               rtol=5e-2, atol=5e-2)

    print("KERNEL_OK")
</pallas_src>

<mosaic_0001>
module attributes {stable_mosaic.version = 11 : i64} {
  func.func @kernel(%arg0: i32, %arg1: memref<1x4x4x256xf32, #tpu.memory_space<vmem>>, %arg2: memref<9x8x4xf32, #tpu.memory_space<vmem>>, %arg3: memref<8x1xf32, #tpu.memory_space<vmem>>, %arg4: memref<1x8x128xf32, #tpu.memory_space<vmem>>) attributes {dimension_semantics = [#tpu.dimension_semantics<parallel>], iteration_bounds = array<i64: 2>, scalar_prefetch = 0 : i64, scratch_operands = 0 : i64, tpu.core_type = #tpu.core_type<tc>, window_params = [{transform_indices = @transform_0, window_bounds = array<i64: 1, 4, 4, 256>}, {pipeline_mode = #tpu.pipeline_mode<synchronous>, transform_indices = @transform_1, window_bounds = array<i64: 9, 8, 4>}, {pipeline_mode = #tpu.pipeline_mode<synchronous>, transform_indices = @transform_2, window_bounds = array<i64: 8, 1>}, {transform_indices = @transform_3, window_bounds = array<i64: 1, 8, 128>}]} {
    %cst = arith.constant 0.000000e+00 : f32
    %0 = vector.broadcast %cst : f32 to vector<8x128xf32>
    %c0 = arith.constant 0 : index
    %c0_0 = arith.constant 0 : index
    %c0_1 = arith.constant 0 : index
    %c0_2 = arith.constant 0 : index
    %1 = vector.load %arg1[%c0, %c0_0, %c0_1, %c0_2] : memref<1x4x4x256xf32, #tpu.memory_space<vmem>>, vector<1x1x4x128xf32>
    %2 = vector.shape_cast %1 : vector<1x1x4x128xf32> to vector<4x128xf32>
    %c0_3 = arith.constant 0 : index
    %c0_4 = arith.constant 0 : index
    %c0_5 = arith.constant 0 : index
    %3 = vector.load %arg2[%c0_3, %c0_4, %c0_5] : memref<9x8x4xf32, #tpu.memory_space<vmem>>, vector<1x8x4xf32>
    %4 = vector.shape_cast %3 : vector<1x8x4xf32> to vector<8x4xf32>
    %cst_6 = arith.constant dense<0.000000e+00> : vector<8x128xf32>
    %5 = tpu.matmul %4, %2, %cst_6 {dimension_numbers = #tpu.dot_dimension_numbers<[1], [0], [0], [1], [0, 0, 1, 1], [], []>} : vector<8x4xf32>, vector<4x128xf32>, vector<8x128xf32> -> vector<8x128xf32>
    %6 = arith.addf %0, %5 : vector<8x128xf32>
    %c0_7 = arith.constant 0 : index
    %c1 = arith.constant 1 : index
    %c0_8 = arith.constant 0 : index
    %c0_9 = arith.constant 0 : index
    %7 = vector.load %arg1[%c0_7, %c1, %c0_8, %c0_9] : memref<1x4x4x256xf32, #tpu.memory_space<vmem>>, vector<1x1x4x128xf32>
    %8 = vector.shape_cast %7 : vector<1x1x4x128xf32> to vector<4x128xf32>
    %c1_10 = arith.constant 1 : index
    %c0_11 = arith.constant 0 : index
    %c0_12 = arith.constant 0 : index
    %9 = vector.load %arg2[%c1_10, %c0_11, %c0_12] : memref<9x8x4xf32, #tpu.memory_space<vmem>>, vector<1x8x4xf32>
    %10 = vector.shape_cast %9 : vector<1x8x4xf32> to vector<8x4xf32>
    %cst_13 = arith.constant dense<0.000000e+00> : vector<8x128xf32>
    %11 = tpu.matmul %10, %8, %cst_13 {dimension_numbers = #tpu.dot_dimension_numbers<[1], [0], [0], [1], [0, 0, 1, 1], [], []>} : vector<8x4xf32>, vector<4x128xf32>, vector<8x128xf32> -> vector<8x128xf32>
    %12 = arith.addf %6, %11 : vector<8x128xf32>
    %c0_14 = arith.constant 0 : index
    %c0_15 = arith.constant 0 : index
    %c0_16 = arith.constant 0 : index
    %c1_17 = arith.constant 1 : index
    %13 = vector.load %arg1[%c0_14, %c0_15, %c0_16, %c1_17] : memref<1x4x4x256xf32, #tpu.memory_space<vmem>>, vector<1x1x4x128xf32>
    %14 = vector.shape_cast %13 : vector<1x1x4x128xf32> to vector<4x128xf32>
    %c2 = arith.constant 2 : index
    %c0_18 = arith.constant 0 : index
    %c0_19 = arith.constant 0 : index
    %15 = vector.load %arg2[%c2, %c0_18, %c0_19] : memref<9x8x4xf32, #tpu.memory_space<vmem>>, vector<1x8x4xf32>
    %16 = vector.shape_cast %15 : vector<1x8x4xf32> to vector<8x4xf32>
    %cst_20 = arith.constant dense<0.000000e+00> : vector<8x128xf32>
    %17 = tpu.matmul %16, %14, %cst_20 {dimension_numbers = #tpu.dot_dimension_numbers<[1], [0], [0], [1], [0, 0, 1, 1], [], []>} : vector<8x4xf32>, vector<4x128xf32>, vector<8x128xf32> -> vector<8x128xf32>
    %18 = arith.addf %12, %17 : vector<8x128xf32>
    %c0_21 = arith.constant 0 : index
    %c2_22 = arith.constant 2 : index
    %c0_23 = arith.constant 0 : index
    %c0_24 = arith.constant 0 : index
    %19 = vector.load %arg1[%c0_21, %c2_22, %c0_23, %c0_24] : memref<1x4x4x256xf32, #tpu.memory_space<vmem>>, vector<1x1x4x128xf32>
    %20 = vector.shape_cast %19 : vector<1x1x4x128xf32> to vector<4x128xf32>
    %c3 = arith.constant 3 : index
    %c0_25 = arith.constant 0 : index
    %c0_26 = arith.constant 0 : index
    %21 = vector.load %arg2[%c3, %c0_25, %c0_26] : memref<9x8x4xf32, #tpu.memory_space<vmem>>, vector<1x8x4xf32>
    %22 = vector.shape_cast %21 : vector<1x8x4xf32> to vector<8x4xf32>
    %cst_27 = arith.constant dense<0.000000e+00> : vector<8x128xf32>
    %23 = tpu.matmul %22, %20, %cst_27 {dimension_numbers = #tpu.dot_dimension_numbers<[1], [0], [0], [1], [0, 0, 1, 1], [], []>} : vector<8x4xf32>, vector<4x128xf32>, vector<8x128xf32> -> vector<8x128xf32>
    %24 = arith.addf %18, %23 : vector<8x128xf32>
    %c0_28 = arith.constant 0 : index
    %c3_29 = arith.constant 3 : index
    %c0_30 = arith.constant 0 : index
    %c0_31 = arith.constant 0 : index
    %25 = vector.load %arg1[%c0_28, %c3_29, %c0_30, %c0_31] : memref<1x4x4x256xf32, #tpu.memory_space<vmem>>, vector<1x1x4x128xf32>
    %26 = vector.shape_cast %25 : vector<1x1x4x128xf32> to vector<4x128xf32>
    %c4 = arith.constant 4 : index
    %c0_32 = arith.constant 0 : index
    %c0_33 = arith.constant 0 : index
    %27 = vector.load %arg2[%c4, %c0_32, %c0_33] : memref<9x8x4xf32, #tpu.memory_space<vmem>>, vector<1x8x4xf32>
    %28 = vector.shape_cast %27 : vector<1x8x4xf32> to vector<8x4xf32>
    %cst_34 = arith.constant dense<0.000000e+00> : vector<8x128xf32>
    %29 = tpu.matmul %28, %26, %cst_34 {dimension_numbers = #tpu.dot_dimension_numbers<[1], [0], [0], [1], [0, 0, 1, 1], [], []>} : vector<8x4xf32>, vector<4x128xf32>, vector<8x128xf32> -> vector<8x128xf32>
    %30 = arith.addf %24, %29 : vector<8x128xf32>
    %c0_35 = arith.constant 0 : index
    %c2_36 = arith.constant 2 : index
    %c0_37 = arith.constant 0 : index
    %c1_38 = arith.constant 1 : index
    %31 = vector.load %arg1[%c0_35, %c2_36, %c0_37, %c1_38] : memref<1x4x4x256xf32, #tpu.memory_space<vmem>>, vector<1x1x4x128xf32>
    %32 = vector.shape_cast %31 : vector<1x1x4x128xf32> to vector<4x128xf32>
    %c5 = arith.constant 5 : index
    %c0_39 = arith.constant 0 : index
    %c0_40 = arith.constant 0 : index
    %33 = vector.load %arg2[%c5, %c0_39, %c0_40] : memref<9x8x4xf32, #tpu.memory_space<vmem>>, vector<1x8x4xf32>
    %34 = vector.shape_cast %33 : vector<1x8x4xf32> to vector<8x4xf32>
    %cst_41 = arith.constant dense<0.000000e+00> : vector<8x128xf32>
    %35 = tpu.matmul %34, %32, %cst_41 {dimension_numbers = #tpu.dot_dimension_numbers<[1], [0], [0], [1], [0, 0, 1, 1], [], []>} : vector<8x4xf32>, vector<4x128xf32>, vector<8x128xf32> -> vector<8x128xf32>
    %36 = arith.addf %30, %35 : vector<8x128xf32>
    %c0_42 = arith.constant 0 : index
    %c0_43 = arith.constant 0 : index
    %c0_44 = arith.constant 0 : index
    %c9 = arith.constant 9 : index
    %37 = vector.load %arg1[%c0_42, %c0_43, %c0_44, %c9] : memref<1x4x4x256xf32, #tpu.memory_space<vmem>>, vector<1x1x4x128xf32>
    %38 = vector.shape_cast %37 : vector<1x1x4x128xf32> to vector<4x128xf32>
    %c6 = arith.constant 6 : index
    %c0_45 = arith.constant 0 : index
    %c0_46 = arith.constant 0 : index
    %39 = vector.load %arg2[%c6, %c0_45, %c0_46] : memref<9x8x4xf32, #tpu.memory_space<vmem>>, vector<1x8x4xf32>
    %40 = vector.shape_cast %39 : vector<1x8x4xf32> to vector<8x4xf32>
    %cst_47 = arith.constant dense<0.000000e+00> : vector<8x128xf32>
    %41 = tpu.matmul %40, %38, %cst_47 {dimension_numbers = #tpu.dot_dimension_numbers<[1], [0], [0], [1], [0, 0, 1, 1], [], []>} : vector<8x4xf32>, vector<4x128xf32>, vector<8x128xf32> -> vector<8x128xf32>
    %42 = arith.addf %36, %41 : vector<8x128xf32>
    %c0_48 = arith.constant 0 : index
    %c1_49 = arith.constant 1 : index
    %c0_50 = arith.constant 0 : index
    %c9_51 = arith.constant 9 : index
    %43 = vector.load %arg1[%c0_48, %c1_49, %c0_50, %c9_51] : memref<1x4x4x256xf32, #tpu.memory_space<vmem>>, vector<1x1x4x128xf32>
    %44 = vector.shape_cast %43 : vector<1x1x4x128xf32> to vector<4x128xf32>
    %c7 = arith.constant 7 : index
    %c0_52 = arith.constant 0 : index
    %c0_53 = arith.constant 0 : index
    %45 = vector.load %arg2[%c7, %c0_52, %c0_53] : memref<9x8x4xf32, #tpu.memory_space<vmem>>, vector<1x8x4xf32>
    %46 = vector.shape_cast %45 : vector<1x8x4xf32> to vector<8x4xf32>
    %cst_54 = arith.constant dense<0.000000e+00> : vector<8x128xf32>
    %47 = tpu.matmul %46, %44, %cst_54 {dimension_numbers = #tpu.dot_dimension_numbers<[1], [0], [0], [1], [0, 0, 1, 1], [], []>} : vector<8x4xf32>, vector<4x128xf32>, vector<8x128xf32> -> vector<8x128xf32>
    %48 = arith.addf %42, %47 : vector<8x128xf32>
    %c0_55 = arith.constant 0 : index
    %c0_56 = arith.constant 0 : index
    %c0_57 = arith.constant 0 : index
    %c10 = arith.constant 10 : index
    %49 = vector.load %arg1[%c0_55, %c0_56, %c0_57, %c10] : memref<1x4x4x256xf32, #tpu.memory_space<vmem>>, vector<1x1x4x128xf32>
    %50 = vector.shape_cast %49 : vector<1x1x4x128xf32> to vector<4x128xf32>
    %c8 = arith.constant 8 : index
    %c0_58 = arith.constant 0 : index
    %c0_59 = arith.constant 0 : index
    %51 = vector.load %arg2[%c8, %c0_58, %c0_59] : memref<9x8x4xf32, #tpu.memory_space<vmem>>, vector<1x8x4xf32>
    %52 = vector.shape_cast %51 : vector<1x8x4xf32> to vector<8x4xf32>
    %cst_60 = arith.constant dense<0.000000e+00> : vector<8x128xf32>
    %53 = tpu.matmul %52, %50, %cst_60 {dimension_numbers = #tpu.dot_dimension_numbers<[1], [0], [0], [1], [0, 0, 1, 1], [], []>} : vector<8x4xf32>, vector<4x128xf32>, vector<8x128xf32> -> vector<8x128xf32>
    %54 = arith.addf %48, %53 : vector<8x128xf32>
    %c0_61 = arith.constant 0 : index
    %c0_62 = arith.constant 0 : index
    %55 = vector.load %arg3[%c0_61, %c0_62] : memref<8x1xf32, #tpu.memory_space<vmem>>, vector<8x1xf32>
    %56 = vector.broadcast %55 : vector<8x1xf32> to vector<8x128xf32>
    %57 = arith.addf %54, %56 : vector<8x128xf32>
    %cst_63 = arith.constant 5.000000e-01 : f32
    %58 = vector.broadcast %cst_63 : f32 to vector<8x128xf32>
    %59 = arith.mulf %58, %57 : vector<8x128xf32>
    %cst_64 = arith.constant 0.707106769 : f32
    %60 = vector.broadcast %cst_64 : f32 to vector<8x128xf32>
    %61 = arith.mulf %57, %60 : vector<8x128xf32>
    %62 = math.absf %61 : vector<8x128xf32>
    %cst_65 = arith.constant 0.327591091 : f32
    %63 = vector.broadcast %cst_65 : f32 to vector<8x128xf32>
    %64 = arith.mulf %63, %62 : vector<8x128xf32>
    %cst_66 = arith.constant 1.000000e+00 : f32
    %65 = vector.broadcast %cst_66 : f32 to vector<8x128xf32>
    %66 = arith.addf %65, %64 : vector<8x128xf32>
    %67 = tpu.reciprocal %66 {approx = true} : vector<8x128xf32> -> vector<8x128xf32>
    %68 = arith.mulf %66, %67 : vector<8x128xf32>
    %cst_67 = arith.constant 2.000000e+00 : f32
    %69 = vector.broadcast %cst_67 : f32 to vector<8x128xf32>
    %70 = arith.subf %69, %68 : vector<8x128xf32>
    %71 = arith.mulf %67, %70 : vector<8x128xf32>
    %72 = arith.mulf %66, %71 : vector<8x128xf32>
    %cst_68 = arith.constant 2.000000e+00 : f32
    %73 = vector.broadcast %cst_68 : f32 to vector<8x128xf32>
    %74 = arith.subf %73, %72 : vector<8x128xf32>
    %75 = arith.mulf %71, %74 : vector<8x128xf32>
    %cst_69 = arith.constant 1.06140542 : f32
    %76 = vector.broadcast %cst_69 : f32 to vector<8x128xf32>
    %77 = arith.mulf %76, %75 : vector<8x128xf32>
    %cst_70 = arith.constant -1.45315206 : f32
    %78 = vector.broadcast %cst_70 : f32 to vector<8x128xf32>
    %79 = arith.addf %77, %78 : vector<8x128xf32>
    %80 = arith.mulf %79, %75 : vector<8x128xf32>
    %cst_71 = arith.constant 1.42141378 : f32
    %81 = vector.broadcast %cst_71 : f32 to vector<8x128xf32>
    %82 = arith.addf %80, %81 : vector<8x128xf32>
    %83 = arith.mulf %82, %75 : vector<8x128xf32>
    %cst_72 = arith.constant -0.284496725 : f32
    %84 = vector.broadcast %cst_72 : f32 to vector<8x128xf32>
    %85 = arith.addf %83, %84 : vector<8x128xf32>
    %86 = arith.mulf %85, %75 : vector<8x128xf32>
    %cst_73 = arith.constant 0.254829586 : f32
    %87 = vector.broadcast %cst_73 : f32 to vector<8x128xf32>
    %88 = arith.addf %86, %87 : vector<8x128xf32>
    %89 = arith.mulf %88, %75 : vector<8x128xf32>
    %cst_74 = arith.constant 0.000000e+00 : f32
    %90 = vector.broadcast %cst_74 : f32 to vector<8x128xf32>
    %91 = arith.subf %90, %62 : vector<8x128xf32>
    %92 = arith.mulf %91, %62 : vector<8x128xf32>
    %93 = math.exp %92 : vector<8x128xf32>
    %94 = arith.mulf %89, %93 : vector<8x128xf32>
    %cst_75 = arith.constant 1.000000e+00 : f32
    %95 = vector.broadcast %cst_75 : f32 to vector<8x128xf32>
    %96 = arith.subf %95, %94 : vector<8x128xf32>
    %cst_76 = arith.constant 0.000000e+00 : f32
    %97 = vector.broadcast %cst_76 : f32 to vector<8x128xf32>
    %98 = arith.cmpf oge, %61, %97 : vector<8x128xf32>
    %cst_77 = arith.constant 0.000000e+00 : f32
    %99 = vector.broadcast %cst_77 : f32 to vector<8x128xf32>
    %100 = arith.subf %99, %96 : vector<8x128xf32>
    %101 = arith.select %98, %96, %100 : vector<8x128xi1>, vector<8x128xf32>
    %cst_78 = arith.constant 1.000000e+00 : f32
    %102 = vector.broadcast %cst_78 : f32 to vector<8x128xf32>
    %103 = arith.addf %102, %101 : vector<8x128xf32>
    %104 = arith.mulf %59, %103 : vector<8x128xf32>
    %c0_79 = arith.constant 0 : index
    %c0_80 = arith.constant 0 : index
    %c0_81 = arith.constant 0 : index
    %105 = vector.load %arg4[%c0_79, %c0_80, %c0_81] : memref<1x8x128xf32, #tpu.memory_space<vmem>>, vector<1x8x128xf32>
    %106 = vector.shape_cast %105 : vector<1x8x128xf32> to vector<8x128xf32>
    %107 = vector.shape_cast %104 : vector<8x128xf32> to vector<1x8x128xf32>
    tpu.vector_store %arg4[%c0_79, %c0_80, %c0_81], %107 {strides = array<i32>} : memref<1x8x128xf32, #tpu.memory_space<vmem>>, vector<1x8x128xf32>,
    return
  }
  func.func @transform_0(%arg0: i32) -> (i32, i32, i32, i32) {
    %c0_i32 = arith.constant 0 : i32
    %c0_i32_0 = arith.constant 0 : i32
    %c0_i32_1 = arith.constant 0 : i32
    %c0_i32_2 = arith.constant 0 : i32
    return %arg0, %c0_i32, %c0_i32_0, %c0_i32_1 : i32, i32, i32, i32
  }
  func.func @transform_1(%arg0: i32) -> (i32, i32, i32) {
    %c0_i32 = arith.constant 0 : i32
    %c0_i32_0 = arith.constant 0 : i32
    %c0_i32_1 = arith.constant 0 : i32
    %c0_i32_2 = arith.constant 0 : i32
    return %c0_i32, %c0_i32_0, %c0_i32_1 : i32, i32, i32
  }
  func.func @transform_2(%arg0: i32) -> (i32, i32) {
    %c0_i32 = arith.constant 0 : i32
    %c0_i32_0 = arith.constant 0 : i32
    %c0_i32_1 = arith.constant 0 : i32
    return %c0_i32, %c0_i32_0 : i32, i32
  }
  func.func @transform_3(%arg0: i32) -> (i32, i32, i32) {
    %c0_i32 = arith.constant 0 : i32
    %c0_i32_0 = arith.constant 0 : i32
    %c0_i32_1 = arith.constant 0 : i32
    return %arg0, %c0_i32, %c0_i32_0 : i32, i32, i32
  }
}

</mosaic_0001>

<bundles_post_ra>
// kernel: downsampling_forward.1
= control target key start
LH: loop header
LB: loop body
LE: loop exit
PB: predicated region body
PF: predicated region fallthrough
CT: control target
= control target key end

     0   :  { %s1178_s12 = smov 0   ;;  %s1285_s0 = inlined_call_operand.vmem [shape: f32[2,4,4,256], index: 0, kind: input, shape index: {}]   ;;  %s1286_s1 = inlined_call_operand.vmem [shape: f32[9,8,4], index: 1, kind: input, shape index: {}]   ;;  %s1287_s2 = inlined_call_operand.vmem [shape: f32[8,1], index: 2, kind: input, shape index: {}]   ;;  %s1288_s3 = inlined_call_operand.vmem [shape: f32[2,8,128], index: 3, kind: output, shape index: {}]  }
   0x1 LB: > { %s1017_s13 = sadd.s32 4294967295, %s1150_s12   ;;  %p1021_p0 = scmp.ge.s32.totalorder %s1150_s12, 1  ;;  %s1150_s12 = sphi %s1178_s12, %s13_s12  }
   0x2   : > { %p137_p1 = scmp.lt.s32.totalorder %s1150_s12, 3 }
   0x4   : > { %p138_p2 = pnand %p1021_p0, %p137_p1 }
   0x5   : > { %p160_p3 = scmp.lt.s32.totalorder (!%p138_p2), %s1017_s13, 1  ;;  %v1152_v0 = vmov (!%p138_p2), 0.0   ;;  %vm1153_vm0 = vmmov (!%p138_p2), 0   ;;  %vm179_vm1 = vcmask (!%p138_p2), 1043456   ;;  %v170_v1 = vld [vmem:[%s1286_s1] sm:$0xff] (!%p138_p2)  ;;  %vm175_vm2 = vcmask (!%p138_p2), 31744  }
   0x6   : > { %141 = sbr.rel (%p138_p2) target bundleno = 427 (0x1ab), region = 32  ;;  %1082 = vmatprep.subr.mxu1 (!%p138_p2), %v1152_v0  ;;  %1077 = vmatprep.subr.mxu0 (!%p138_p2), %v1152_v0  ;;  %v1026_v4 = vld [vmem:[%s1286_s1 + $0x8] sm:$0xff] (!%p138_p2)  ;;  %s1154_s22 = smov (!%p138_p2), 127   ;;  %v1035_v10 = vld [vmem:[%s1286_s1 + $0x18] sm:$0xff] (!%p138_p2)  ;;  %v1155_v12 = vmov (!%p138_p2), 0   ;;  %v924_v14 = vld [vmem:[%s1287_s2] sm:$0xff] (!%p138_p2) }
   0x7   : > { %1084 = vmatprep.mubr.msk.f32.mxu1 (!%p138_p2), %vm1153_vm0, %v1152_v0  ;;  %1079 = vmatprep.mubr.msk.f32.mxu0 (!%p138_p2), %vm1153_vm0, %v1152_v0  ;;  %s1156_s25 = smov (!%p138_p2), 119   ;;  %s1157_s26 = smov (!%p138_p2), 118   ;;  %vm338_vm3 = vcmask (!%p138_p2), 1039360   ;;  %v1031_v19 = vld [vmem:[%s1286_s1 + $0x10] sm:$0xff] (!%p138_p2)  ;;  %vm673_vm4 = vcmask (!%p138_p2), 973824   ;;  %v1043_v23 = vld [vmem:[%s1286_s1 + $0x28] sm:$0xff] (!%p138_p2) }
   0x8   : > { %1136 = vset.pattern.permute.xlu0 (!%p138_p2), %v1155_v12  ;;  %v1039_v26 = vld [vmem:[%s1286_s1 + $0x20] sm:$0xff] (!%p138_p2)  ;;  %v1046_v30 = vld [vmem:[%s1286_s1 + $0x30] sm:$0xff] (!%p138_p2)  ;;  %v1050_v31 = vld [vmem:[%s1286_s1 + $0x38] sm:$0xff] (!%p138_p2)  ;;  %vm846_vm5 = vcmask (!%p138_p2), 965632  }
   0x9   : > { %v1053_v35 = vld [vmem:[%s1286_s1 + $0x40] sm:$0xff] (!%p138_p2) }
   0xd   : > { %s1290_s13 = smov (!%p160_p3, %s1017_s13), 1 }
   0xe   : > { %s1058_s14 = sshll.u32 %s1290_s13, 5  ;;  %s1024_s16 = sshll.u32 %s1290_s13, 3 }
   0xf   : > { %s1198_s17 = scalar_lea.vmem %s1285_s0, %s1058_s14  ;;  %s168_s19 = scalar_lea.vmem %s1288_s3, %s1024_s16 }
  0x10   : > { %v1042_v2 = vld [vmem:[%s1198_s17 + $0x10] sm:$0xff]  ;;  %v329_v3 = vld [vmem:[%s1198_s17] sm:$0xff]  ;;  %v1025_v8 = vld [vmem:[%s1198_s17 + $0x8] sm:$0xf] }
  0x11   : > { %583 = vrot.lane.b32.xlu1 %v1042_v2, %s1154_s22  ;;  %v582_v5 = vcombine.high %v1042_v2, %v1042_v2  ;;  %334 = vrot.lane.b32.xlu0 %v329_v3, %s1154_s22  ;;  %v333_v6 = vcombine.high %v329_v3, %v329_v3  ;;  %v169_v7 = vld [vmem:[%s1198_s17] sm:$0xf]  ;;  %v1034_v9 = vld [vmem:[%s1198_s17 + $0x10] sm:$0xf] }
  0x12   : > { %1083 = vmatpush3.msk.msra.mxu1 %vm179_vm1, %v169_v7  ;;  %1078 = vmatpush3.msk.msra.mxu0 %vm179_vm1, %v1025_v8  ;;  %v1049_v11 = vld [vmem:[%s1198_s17 + $0x8] sm:$0xff]  ;;  %v1038_v22 = vld [vmem:[%s1198_s17 + $0x18] sm:$0xf] }
  0x13   : > { %1085 = vmatmul.mubr.msk.f32.vlgmr.msra.gmra.mrb[0].mxu1 %vm175_vm2, %v170_v1  ;;  %1080 = vmatmul.mubr.msk.f32.vlgmr.msra.gmra.mrb[0].mxu0 %vm175_vm2, %v1026_v4  ;;  %v755_v13 = vcombine.high %v1049_v11, %v1049_v11 }
  0x14   : > { %1092 = vmatprep.subr.mxu1 %v1152_v0  ;;  %1087 = vmatprep.subr.mxu0 %v1152_v0 }
  0x15   : > { %585 = vrot.lane.b32.xlu1 %v582_v5, %s1154_s22  ;;  %336 = vrot.lane.b32.xlu0 %v333_v6, %s1154_s22 }
  0x16   : > { %1093 = vmatpush3.msk.msra.mxu1 %vm179_vm1, %v1034_v9  ;;  %1094 = vmatprep.mubr.msk.f32.mxu1 %vm1153_vm0, %v1152_v0 }
  0x17   : > { %1102 = vmatprep.subr.mxu1 %v1152_v0  ;;  %1089 = vmatprep.mubr.msk.f32.mxu0 %vm1153_vm0, %v1152_v0 }
  0x18   : > { %1095 = vmatmul.mubr.msk.f32.vlgmr.msra.gmra.mrb[2].mxu1 %vm175_vm2, %v1035_v10 }
  0x19   : > { %671 = vrot.lane.b32.xlu1 %v333_v6, %s1156_s25  ;;  %669 = vrot.lane.b32.xlu0 %v329_v3, %s1156_s25 }
  0x1a   : > { %1104 = vmatprep.mubr.msk.f32.mxu1 %vm1153_vm0, %v1152_v0 }
  0x1d   : > { %758 = vrot.lane.b32.xlu1 %v755_v13, %s1156_s25  ;;  %756 = vrot.lane.b32.xlu0 %v1049_v11, %s1156_s25 }
  0x21   : > { %844 = vrot.lane.b32.xlu1 %v333_v6, %s1157_s26  ;;  %842 = vrot.lane.b32.xlu0 %v329_v3, %s1157_s26 }
  0x25   : > { %927 = vperm.xlu0 %1136, %v924_v14  }
  0x83   : > { %v584_v15 = vpop.permute.xlu1 %583  ;;  %v335_v16 = vpop.permute.xlu0 %334 }
  0x87   : > { %v586_v17 = vpop.permute.xlu1 %585  ;;  %v337_v18 = vpop.permute.xlu0 %336 }
  0x88   : > { %v587_v20 = vsel %vm338_vm3, %v584_v15, %v586_v17  ;;  %v339_v21 = vsel %vm338_vm3, %v335_v16, %v337_v18 }
  0x89   : > { %1088 = vmatpush3.msk.msra.mxu0 %vm179_vm1, %v339_v21  ;;  %1103 = vmatpush3.msk.msra.mxu1 %vm179_vm1, %v587_v20 }
  0x8a   : > { %1090 = vmatmul.mubr.msk.f32.vlgmr.msra.gmra.mrb[2].mxu0 %vm175_vm2, %v1031_v19  ;;  %1097 = vmatprep.subr.mxu0 %v1152_v0 }
  0x8b   : > { %v672_v24 = vpop.permute.xlu1 %671  ;;  %v670_v25 = vpop.permute.xlu0 %669  ;;  %1098 = vmatpush3.msk.msra.mxu0 %vm179_vm1, %v1038_v22  ;;  %1099 = vmatprep.mubr.msk.f32.mxu0 %vm1153_vm0, %v1152_v0 }
  0x8c   : > { %v674_v27 = vsel %vm673_vm4, %v670_v25, %v672_v24  ;;  %1107 = vmatprep.subr.mxu0 %v1152_v0  ;;  %1105 = vmatmul.mubr.msk.f32.vlgmr.msra.gmra.mrb[4].mxu1 %vm175_vm2, %v1043_v23 }
  0x8d   : > { %1112 = vmatprep.subr.mxu1 %v1152_v0  ;;  %1114 = vmatprep.mubr.msk.f32.mxu1 %vm1153_vm0, %v1152_v0 }
  0x8e   : > { %1100 = vmatmul.mubr.msk.f32.vlgmr.msra.gmra.mrb[4].mxu0 %vm175_vm2, %v1039_v26 }
  0x8f   : > { %1108 = vmatpush3.msk.msra.mxu0 %vm179_vm1, %v674_v27  ;;  %v759_v28 = vpop.permute.xlu1 %758  ;;  %v757_v29 = vpop.permute.xlu0 %756  ;;  %1109 = vmatprep.mubr.msk.f32.mxu0 %vm1153_vm0, %v1152_v0 }
  0x90   : > { %v760_v32 = vsel %vm673_vm4, %v757_v29, %v759_v28  ;;  %1117 = vmatprep.subr.mxu0 %v1152_v0 }
  0x91   : > { %1113 = vmatpush3.msk.msra.mxu1 %vm179_vm1, %v760_v32 }
  0x92   : > { %1110 = vmatmul.mubr.msk.f32.vlgmr.msra.gmra.mrb[6].mxu0 %vm175_vm2, %v1046_v30  ;;  %1115 = vmatmul.mubr.msk.f32.vlgmr.msra.gmra.mrb[6].mxu1 %vm175_vm2, %v1050_v31 }
  0x93   : > { %v845_v33 = vpop.permute.xlu1 %844  ;;  %v843_v34 = vpop.permute.xlu0 %842  ;;  %1119 = vmatprep.mubr.msk.f32.mxu0 %vm1153_vm0, %v1152_v0 }
  0x94   : > { %v847_v36 = vsel %vm846_vm5, %v843_v34, %v845_v33 }
  0x95   : > { %1118 = vmatpush3.msk.msra.mxu0 %vm179_vm1, %v847_v36 }
  0x96   : > { %1120 = vmatmul.mubr.msk.f32.vlgmr.msra.gmra.mrb[8].mxu0 %vm175_vm2, %v1053_v35 }
  0xa4   : > { %v928_v61 = vpop.permute.xlu0 %927 }
  0xe6   : > { %v249_v37 = vpop.f32.mrb[0].mxu0  ;;  %v325_v38 = vpop.f32.mrb[0].mxu1 }
  0xe7   : > { %v326_v39 = vadd.f32 %v325_v38, %v249_v37  ;;  %v1081_v40 = vpop.f32.mrb[1].mxu0  ;;  %v1086_v41 = vpop.f32.mrb[1].mxu1 }
  0xeb   : > { %v492_v42 = vpop.f32.mrb[2].mxu1 }
  0xec   : > { %v1096_v43 = vpop.f32.mrb[3].mxu1 }
 0x15d   : > { %v411_v44 = vpop.f32.mrb[2].mxu0 }
 0x15e   : > { %v415_v45 = vadd.f32 %v411_v44, %v326_v39  ;;  %v1091_v46 = vpop.f32.mrb[3].mxu0 }
 0x15f   : > { %v659_v47 = vpop.f32.mrb[4].mxu1 }
 0x160   : > { %v496_v48 = vadd.f32 %v492_v42, %v415_v45  ;;  %v1106_v49 = vpop.f32.mrb[5].mxu1 }
 0x161   : > { %v573_v50 = vpop.f32.mrb[4].mxu0 }
 0x162   : > { %v577_v51 = vadd.f32 %v573_v50, %v496_v48  ;;  %v1101_v52 = vpop.f32.mrb[5].mxu0 }
 0x164   : > { %v663_v53 = vadd.f32 %v659_v47, %v577_v51 }
 0x165   : > { %v746_v54 = vpop.f32.mrb[6].mxu0  ;;  %v832_v55 = vpop.f32.mrb[6].mxu1 }
 0x166   : > { %v750_v56 = vadd.f32 %v746_v54, %v663_v53  ;;  %v1111_v57 = vpop.f32.mrb[7].mxu0  ;;  %v1116_v58 = vpop.f32.mrb[7].mxu1 }
 0x168   : > { %v836_v59 = vadd.f32 %v832_v55, %v750_v56 }
 0x169   : > { %v919_v60 = vpop.f32.mrb[8].mxu0 }
 0x16a   : > { %v923_v62 = vadd.f32 %v919_v60, %v836_v59  ;;  %v1121_v63 = vpop.f32.mrb[9].mxu0 }
 0x16c   : > { %v930_v0 = vadd.f32 %v928_v61, %v923_v62 }
 0x16e   : > { %v932_v1 = vmul.f32 0.70710677, %v930_v0  ;;  %v931_v29 = vmul.f32 0.5, %v930_v0 }
 0x170   : > { %v933_v2 = vand.u32 2147483647, %v932_v1  ;;  %vm958_vm6 = vcmp.ge.f32.partialorder %v932_v1, 0.0 }
 0x172   : > { %v934_v3 = vmul.f32 0.3275911, %v933_v2  ;;  %v952_v10 = vsub.f32 0.0, %v933_v2 }
 0x174   : > { %v935_v4 = vadd.f32 1.0, %v934_v3  ;;  %v953_v13 = vmul.f32 %v952_v10, %v933_v2 }
 0x176   : > { %1140 = vrcp.f32 %v935_v4  ;;  %v954_v16 = vmul.f32 1.442695, %v953_v13 }
 0x178   : > { %1142 = vpow2.f32 %v954_v16 }
 0x180   : > { %v1141_v5 = vpop.eup %1140 }
 0x181   : > { %v937_v6 = vmul.f32 %v1141_v5, %v935_v4 }
 0x182   : > { %v1143_v24 = vpop.eup %1142 }
 0x183   : > { %v938_v7 = vsub.f32 2.0, %v937_v6 }
 0x185   : > { %v939_v8 = vmul.f32 %v1141_v5, %v938_v7 }
 0x187   : > { %v940_v9 = vmul.f32 %v939_v8, %v935_v4 }
 0x189   : > { %v941_v11 = vsub.f32 2.0, %v940_v9 }
 0x18b   : > { %v942_v12 = vmul.f32 %v941_v11, %v939_v8 }
 0x18d   : > { %v943_v14 = vmul.f32 1.0614054, %v942_v12 }
 0x18f   : > { %v944_v15 = vadd.f32 -1.4531521, %v943_v14 }
 0x191   : > { %v945_v17 = vmul.f32 %v944_v15, %v942_v12 }
 0x193   : > { %v946_v18 = vadd.f32 1.4214138, %v945_v17 }
 0x195   : > { %v947_v19 = vmul.f32 %v946_v18, %v942_v12 }
 0x197   : > { %v948_v20 = vadd.f32 -0.28449672, %v947_v19 }
 0x199   : > { %v949_v21 = vmul.f32 %v948_v20, %v942_v12 }
 0x19b   : > { %v950_v22 = vadd.f32 0.2548296, %v949_v21 }
 0x19d   : > { %v951_v23 = vmul.f32 %v950_v22, %v942_v12 }
 0x19f   : > { %v956_v25 = vmul.f32 %v1143_v24, %v951_v23 }
 0x1a1   : > { %v957_v26 = vsub.f32 1.0, %v956_v25 }
 0x1a3   : > { %v959_v27 = vsub.f32 0.0, %v957_v26 }
 0x1a5   : > { %v960_v28 = vsel %vm958_vm6, %v957_v26, %v959_v27 }
 0x1a6   : > { %v961_v30 = vadd.f32 1.0, %v960_v28 }
 0x1a8   : > { %v962_v31 = vmul.f32 %v961_v30, %v931_v29 }
 0x1aa   : > { %963 = vst [vmem:[%s168_s19] sm:$0xff] %v962_v31 }
 0x1ab PF: > { %s13_s12 = sadd.s32 1, %s1150_s12  }
 0x1ac   : > { %p10_p4 = scmp.ge.s32.totalorder %s13_s12, 4  }
 0x1ae   :  { %12 = sbr.rel (!%p10_p4) target bundleno = 1 (0x1), region = 73 }

</bundles_post_ra>
